<compile_context>
chip_gen: v6e
topology: v6e:2x2x1
jax: 0.10.0
libtpu: 0.0.40
codegen_flags: <defaults>
</compile_context>

<pallas_src>
import jax
import jax.numpy as jnp
from jax import lax
from jax.experimental import pallas as pl
from jax.experimental.pallas import tpu as pltpu

WINDOW = 9                               # windows_size
PAD = WINDOW // 2                        # 4
EPS = 1e-5                               # num_stab_const
INV_WV = 1.0 / float(WINDOW * WINDOW)    # 1 / window_volume (dim == 2)


def _ncc2_kernel(i_ref, j_ref, sh_ref, sw_ref, out_ref):
    rows, W = i_ref.shape            # rows = TB * Hp (TB images row-stacked)
    Hp = sh_ref.shape[0]
    TB = rows // Hp
    nblk = 5 * TB

    I = i_ref[...].astype(jnp.float32)       # (TB*Hp, W)
    J = j_ref[...].astype(jnp.float32)
    sh = sh_ref[...]                          # (Hp, Hp) bf16 band; rows >= H zeroed
    sw = sw_ref[...]                          # (W, W)  bf16 band

    # ---- pass 1: width box sum; 5 products x TB images fused along M -------
    prods = jnp.concatenate([I, J, I * I, J * J, I * J], axis=0)   # (5*TB*Hp, W)
    hi = prods.astype(jnp.bfloat16)
    lo = (prods - hi.astype(jnp.float32)).astype(jnp.bfloat16)
    y = (jnp.dot(hi, sw, preferred_element_type=jnp.float32)
         + jnp.dot(lo, sw, preferred_element_type=jnp.float32))    # (5*TB*Hp, W)

    # ---- relayout rows -> lanes so pass 2 fills the MXU N dimension --------
    y_lanes = jnp.concatenate(
        [y[b * Hp:(b + 1) * Hp, :] for b in range(nblk)], axis=1)  # (Hp, 5*TB*W)

    # ---- pass 2: height box sum, one hi/lo matmul pair, N = 5*TB*W ---------
    hi2 = y_lanes.astype(jnp.bfloat16)
    lo2 = (y_lanes - hi2.astype(jnp.float32)).astype(jnp.bfloat16)
    box = (jnp.dot(sh, hi2, preferred_element_type=jnp.float32)
           + jnp.dot(sh, lo2, preferred_element_type=jnp.float32))  # (Hp, 5*TB*W)

    g = TB * W
    I_sum = box[:, 0 * g:1 * g]
    J_sum = box[:, 1 * g:2 * g]
    I2_sum = box[:, 2 * g:3 * g]
    J2_sum = box[:, 3 * g:4 * g]
    IJ_sum = box[:, 4 * g:5 * g]

    cross = IJ_sum - I_sum * J_sum * INV_WV
    I_var = I2_sum - I_sum * I_sum * INV_WV
    J_var = J2_sum - J_sum * J_sum * INV_WV
    # Exact reciprocal kept (validated against an f32 reference); padded rows
    # have cross = var = 0 -> cc = 0, so they drop out of the mean.
    cc = cross * cross * pl.reciprocal(I_var * J_var + EPS, approx=False)

    # Only a sublane (row) reduction per step; final cross-lane / cross-chunk
    # reduction, negate and mean happen in the wrapper (keeps the grid axis
    # fully parallel — both TensorCores on v7x).
    out_ref[0] = jnp.sum(cc, axis=0, keepdims=True)          # (1, TB*W)


def _choose_tb(B, Hp, W, itemsize):
    """Batch tile: FLOPs no longer depend on TB, so pick the largest TB that
    (a) divides B, (b) leaves >= 2 grid steps when B >= 2 (v7x has 2 TCs),
    (c) keeps the per-step working set well inside every generation's VMEM
    (v7x: 64 MiB per TC)."""
    budget = 24 * 1024 * 1024
    best = 1
    for tb in range(1, min(B, 8) + 1):      # cap concat fan-in at 5*8 slices
        if B % tb:
            continue
        if B >= 2 and B // tb < 2:
            continue
        per_step = (4 * tb * Hp * W * itemsize      # 2 inputs, double-buffered
                    + 24 * tb * Hp * W * 4          # peak live f32/bf16 temporaries
                    + 4 * (Hp * Hp + W * W))        # bf16 bands, double-buffered
        if per_step <= budget:
            best = tb
    return best


def ncc2_loss(I, J):
    """Pallas-TPU -mean(LNCC^2), dim=2, 9x9 window.  I, J: [B,1,H,W] or [B,H,W]."""
    if I.ndim == 4:
        assert I.shape[1] == 1
        I = I[:, 0]
    if J.ndim == 4:
        assert J.shape[1] == 1
        J = J[:, 0]
    # PyTorch-style batch broadcasting (size-1 batch only).
    if I.shape[0] != J.shape[0]:
        nb = max(I.shape[0], J.shape[0])
        I = jnp.broadcast_to(I, (nb,) + I.shape[1:])
        J = jnp.broadcast_to(J, (nb,) + J.shape[1:])
    assert I.shape == J.shape
    B, H, W = I.shape

    # Sublane-align each image's row block; padded rows are zero and masked
    # out of the loss via zeroed rows of the height band.
    Hp = ((H + 7) // 8) * 8
    if Hp != H:
        I = jnp.pad(I, ((0, 0), (0, Hp - H), (0, 0)))
        J = jnp.pad(J, ((0, 0), (0, Hp - H), (0, 0)))

    TB = _choose_tb(B, Hp, W, I.dtype.itemsize)
    n_chunks = B // TB

    # Keep native dtype (bf16 inputs -> half the HBM traffic); cast in-kernel.
    I2 = I.reshape(B * Hp, W)
    J2 = J.reshape(B * Hp, W)

    # Banded-ones filters (0/1 are exact in bf16):
    #   sw[l, c] = 1  iff |l - c| <= PAD                      (width box sum)
    #   sh[r, k] = 1  iff |r - k| <= PAD and r < H   (height box sum + row mask)
    rh = jnp.arange(Hp)
    sh = ((jnp.abs(rh[:, None] - rh[None, :]) <= PAD)
          & (rh[:, None] < H)).astype(jnp.bfloat16)
    cw = jnp.arange(W)
    sw = (jnp.abs(cw[:, None] - cw[None, :]) <= PAD).astype(jnp.bfloat16)

    matmul_flops = 20 * B * Hp * W * (W + Hp)   # 2 passes x 2 bf16 dots x 5 products
    bytes_accessed = (2 * B * Hp * W * I2.dtype.itemsize
                      + 2 * (Hp * Hp + W * W) + B * W * 4)

    partial = pl.pallas_call(
        _ncc2_kernel,
        out_shape=jax.ShapeDtypeStruct((n_chunks, 1, TB * W), jnp.float32),
        grid_spec=pltpu.PrefetchScalarGridSpec(
            num_scalar_prefetch=0,
            grid=(n_chunks,),
            in_specs=[
                pl.BlockSpec((TB * Hp, W), lambda i: (i, 0)),
                pl.BlockSpec((TB * Hp, W), lambda i: (i, 0)),
                pl.BlockSpec((Hp, Hp), lambda i: (0, 0)),   # resident, DMA'd once
                pl.BlockSpec((W, W), lambda i: (0, 0)),     # resident, DMA'd once
            ],
            out_specs=pl.BlockSpec((1, 1, TB * W), lambda i: (i, 0, 0)),
        ),
        compiler_params=pltpu.CompilerParams(
            dimension_semantics=("parallel",),   # independent chunks -> 2 TCs on v7x
            vmem_limit_bytes=48 * 1024 * 1024),
        cost_estimate=pl.CostEstimate(
            flops=int(matmul_flops + 30 * B * Hp * W),
            transcendentals=0,
            bytes_accessed=int(bytes_accessed)),
    )(I2, J2, sh, sw)

    # Finalize: -mean over the B*H*W real pixels (padded rows contribute 0).
    return -jnp.sum(partial) / (B * H * W)


def ncc2_loss_reference(I, J):
    """Pure-JAX reference (zero-padded 9x9 sum == conv with all-ones filter)."""
    if I.ndim == 4:
        I, J = I[:, 0], J[:, 0]
    if I.shape[0] != J.shape[0]:
        nb = max(I.shape[0], J.shape[0])
        I = jnp.broadcast_to(I, (nb,) + I.shape[1:])
        J = jnp.broadcast_to(J, (nb,) + J.shape[1:])
    I = I.astype(jnp.float32)
    J = J.astype(jnp.float32)

    def box(x):
        return lax.reduce_window(
            x, 0.0, lax.add,
            window_dimensions=(1, WINDOW, WINDOW),
            window_strides=(1, 1, 1),
            padding=((0, 0), (PAD, PAD), (PAD, PAD)))

    wv = float(WINDOW * WINDOW)
    I_sum, J_sum = box(I), box(J)
    I2_sum, J2_sum, IJ_sum = box(I * I), box(J * J), box(I * J)
    cross = IJ_sum - I_sum * J_sum / wv
    I_var = I2_sum - I_sum * I_sum / wv
    J_var = J2_sum - J_sum * J_sum / wv
    cc = cross * cross / (I_var * J_var + EPS)
    return -jnp.mean(cc)


if __name__ == "__main__":
    key = jax.random.PRNGKey(0)
    k1, k2 = jax.random.split(key)
    B, C, H, W = 2, 1, 16, 16
    I = jax.random.uniform(k1, (B, C, H, W), dtype=jnp.float32)
    J = jax.random.uniform(k2, (B, C, H, W), dtype=jnp.float32)

    loss = jax.block_until_ready(jax.jit(ncc2_loss)(I, J))
    ref = jax.block_until_ready(ncc2_loss_reference(I, J))

    assert jnp.isfinite(loss), "non-finite loss"
    assert jnp.allclose(loss, ref, rtol=5e-3, atol=1e-6), (loss, ref)
    print("KERNEL_OK")
</pallas_src>

<mosaic_0001>
module attributes {stable_mosaic.version = 11 : i64} {
  func.func @_ncc2_kernel(%arg0: i32, %arg1: memref<16x16xf32, #tpu.memory_space<vmem>>, %arg2: memref<16x16xf32, #tpu.memory_space<vmem>>, %arg3: memref<16x16xbf16, #tpu.memory_space<vmem>>, %arg4: memref<16x16xbf16, #tpu.memory_space<vmem>>, %arg5: memref<1x1x16xf32, #tpu.memory_space<vmem>>) attributes {dimension_semantics = [#tpu.dimension_semantics<parallel>], iteration_bounds = array<i64: 2>, scalar_prefetch = 0 : i64, scratch_operands = 0 : i64, tpu.core_type = #tpu.core_type<tc>, window_params = [{transform_indices = @transform_0, window_bounds = array<i64: 16, 16>}, {transform_indices = @transform_1, window_bounds = array<i64: 16, 16>}, {pipeline_mode = #tpu.pipeline_mode<synchronous>, transform_indices = @transform_2, window_bounds = array<i64: 16, 16>}, {pipeline_mode = #tpu.pipeline_mode<synchronous>, transform_indices = @transform_3, window_bounds = array<i64: 16, 16>}, {transform_indices = @transform_4, window_bounds = array<i64: 1, 1, 16>}]} {
    %c0 = arith.constant 0 : index
    %c0_0 = arith.constant 0 : index
    %0 = vector.load %arg1[%c0, %c0_0] : memref<16x16xf32, #tpu.memory_space<vmem>>, vector<16x16xf32>
    %c0_1 = arith.constant 0 : index
    %c0_2 = arith.constant 0 : index
    %1 = vector.load %arg2[%c0_1, %c0_2] : memref<16x16xf32, #tpu.memory_space<vmem>>, vector<16x16xf32>
    %c0_3 = arith.constant 0 : index
    %c0_4 = arith.constant 0 : index
    %2 = vector.load %arg3[%c0_3, %c0_4] : memref<16x16xbf16, #tpu.memory_space<vmem>>, vector<16x16xbf16>
    %c0_5 = arith.constant 0 : index
    %c0_6 = arith.constant 0 : index
    %3 = vector.load %arg4[%c0_5, %c0_6] : memref<16x16xbf16, #tpu.memory_space<vmem>>, vector<16x16xbf16>
    %4 = arith.mulf %0, %0 : vector<16x16xf32>
    %5 = arith.mulf %1, %1 : vector<16x16xf32>
    %6 = arith.mulf %0, %1 : vector<16x16xf32>
    %7 = tpu.concatenate %0, %1, %4, %5, %6 in 0 : vector<16x16xf32>, vector<16x16xf32>, vector<16x16xf32>, vector<16x16xf32>, vector<16x16xf32> -> vector<80x16xf32>
    %8 = arith.truncf %7 : vector<80x16xf32> to vector<80x16xbf16>
    %9 = arith.extf %8 : vector<80x16xbf16> to vector<80x16xf32>
    %10 = arith.subf %7, %9 : vector<80x16xf32>
    %11 = arith.truncf %10 : vector<80x16xf32> to vector<80x16xbf16>
    %cst = arith.constant dense<0.000000e+00> : vector<80x16xf32>
    %12 = tpu.matmul %8, %3, %cst {dimension_numbers = #tpu.dot_dimension_numbers<[1], [0], [0], [1], [0, 0, 1, 1], [], []>} : vector<80x16xbf16>, vector<16x16xbf16>, vector<80x16xf32> -> vector<80x16xf32>
    %cst_7 = arith.constant dense<0.000000e+00> : vector<80x16xf32>
    %13 = tpu.matmul %11, %3, %cst_7 {dimension_numbers = #tpu.dot_dimension_numbers<[1], [0], [0], [1], [0, 0, 1, 1], [], []>} : vector<80x16xbf16>, vector<16x16xbf16>, vector<80x16xf32> -> vector<80x16xf32>
    %14 = arith.addf %12, %13 : vector<80x16xf32>
    %15 = vector.extract_strided_slice %14 {offsets = [0, 0], sizes = [16, 16], strides = [1, 1]} : vector<80x16xf32> to vector<16x16xf32>
    %16 = vector.extract_strided_slice %14 {offsets = [16, 0], sizes = [16, 16], strides = [1, 1]} : vector<80x16xf32> to vector<16x16xf32>
    %17 = vector.extract_strided_slice %14 {offsets = [32, 0], sizes = [16, 16], strides = [1, 1]} : vector<80x16xf32> to vector<16x16xf32>
    %18 = vector.extract_strided_slice %14 {offsets = [48, 0], sizes = [16, 16], strides = [1, 1]} : vector<80x16xf32> to vector<16x16xf32>
    %19 = vector.extract_strided_slice %14 {offsets = [64, 0], sizes = [16, 16], strides = [1, 1]} : vector<80x16xf32> to vector<16x16xf32>
    %20 = tpu.concatenate %15, %16, %17, %18, %19 in 1 : vector<16x16xf32>, vector<16x16xf32>, vector<16x16xf32>, vector<16x16xf32>, vector<16x16xf32> -> vector<16x80xf32>
    %21 = arith.truncf %20 : vector<16x80xf32> to vector<16x80xbf16>
    %22 = arith.extf %21 : vector<16x80xbf16> to vector<16x80xf32>
    %23 = arith.subf %20, %22 : vector<16x80xf32>
    %24 = arith.truncf %23 : vector<16x80xf32> to vector<16x80xbf16>
    %cst_8 = arith.constant dense<0.000000e+00> : vector<16x80xf32>
    %25 = tpu.matmul %2, %21, %cst_8 {dimension_numbers = #tpu.dot_dimension_numbers<[1], [0], [0], [1], [0, 0, 1, 1], [], []>} : vector<16x16xbf16>, vector<16x80xbf16>, vector<16x80xf32> -> vector<16x80xf32>
    %cst_9 = arith.constant dense<0.000000e+00> : vector<16x80xf32>
    %26 = tpu.matmul %2, %24, %cst_9 {dimension_numbers = #tpu.dot_dimension_numbers<[1], [0], [0], [1], [0, 0, 1, 1], [], []>} : vector<16x16xbf16>, vector<16x80xbf16>, vector<16x80xf32> -> vector<16x80xf32>
    %27 = arith.addf %25, %26 : vector<16x80xf32>
    %28 = vector.extract_strided_slice %27 {offsets = [0, 0], sizes = [16, 16], strides = [1, 1]} : vector<16x80xf32> to vector<16x16xf32>
    %29 = vector.extract_strided_slice %27 {offsets = [0, 16], sizes = [16, 16], strides = [1, 1]} : vector<16x80xf32> to vector<16x16xf32>
    %30 = vector.extract_strided_slice %27 {offsets = [0, 32], sizes = [16, 16], strides = [1, 1]} : vector<16x80xf32> to vector<16x16xf32>
    %31 = vector.extract_strided_slice %27 {offsets = [0, 48], sizes = [16, 16], strides = [1, 1]} : vector<16x80xf32> to vector<16x16xf32>
    %32 = vector.extract_strided_slice %27 {offsets = [0, 64], sizes = [16, 16], strides = [1, 1]} : vector<16x80xf32> to vector<16x16xf32>
    %33 = arith.mulf %28, %29 : vector<16x16xf32>
    %cst_10 = arith.constant 0.0123456791 : f32
    %34 = vector.broadcast %cst_10 : f32 to vector<16x16xf32>
    %35 = arith.mulf %33, %34 : vector<16x16xf32>
    %36 = arith.subf %32, %35 : vector<16x16xf32>
    %37 = arith.mulf %28, %28 : vector<16x16xf32>
    %cst_11 = arith.constant 0.0123456791 : f32
    %38 = vector.broadcast %cst_11 : f32 to vector<16x16xf32>
    %39 = arith.mulf %37, %38 : vector<16x16xf32>
    %40 = arith.subf %30, %39 : vector<16x16xf32>
    %41 = arith.mulf %29, %29 : vector<16x16xf32>
    %cst_12 = arith.constant 0.0123456791 : f32
    %42 = vector.broadcast %cst_12 : f32 to vector<16x16xf32>
    %43 = arith.mulf %41, %42 : vector<16x16xf32>
    %44 = arith.subf %31, %43 : vector<16x16xf32>
    %45 = arith.mulf %36, %36 : vector<16x16xf32>
    %46 = arith.mulf %40, %44 : vector<16x16xf32>
    %cst_13 = arith.constant 9.99999974E-6 : f32
    %47 = vector.broadcast %cst_13 : f32 to vector<16x16xf32>
    %48 = arith.addf %46, %47 : vector<16x16xf32>
    %49 = tpu.reciprocal %48 : vector<16x16xf32> -> vector<16x16xf32>
    %50 = arith.mulf %45, %49 : vector<16x16xf32>
    %cst_14 = arith.constant dense<0.000000e+00> : vector<16xf32>
    %51 = vector.multi_reduction <add>, %50, %cst_14 [0] : vector<16x16xf32> to vector<16xf32>
    %52 = vector.shape_cast %51 : vector<16xf32> to vector<1x16xf32>
    %c0_15 = arith.constant 0 : index
    %c0_16 = arith.constant 0 : index
    %c0_17 = arith.constant 0 : index
    %53 = vector.load %arg5[%c0_15, %c0_16, %c0_17] : memref<1x1x16xf32, #tpu.memory_space<vmem>>, vector<1x1x16xf32>
    %54 = vector.shape_cast %53 : vector<1x1x16xf32> to vector<1x16xf32>
    %55 = vector.shape_cast %52 : vector<1x16xf32> to vector<1x1x16xf32>
    tpu.vector_store %arg5[%c0_15, %c0_16, %c0_17], %55 {strides = array<i32>} : memref<1x1x16xf32, #tpu.memory_space<vmem>>, vector<1x1x16xf32>,
    return
  }
  func.func @transform_0(%arg0: i32) -> (i32, i32) {
    %c0_i32 = arith.constant 0 : i32
    %c0_i32_0 = arith.constant 0 : i32
    return %arg0, %c0_i32 : i32, i32
  }
  func.func @transform_1(%arg0: i32) -> (i32, i32) {
    %c0_i32 = arith.constant 0 : i32
    %c0_i32_0 = arith.constant 0 : i32
    return %arg0, %c0_i32 : i32, i32
  }
  func.func @transform_2(%arg0: i32) -> (i32, i32) {
    %c0_i32 = arith.constant 0 : i32
    %c0_i32_0 = arith.constant 0 : i32
    %c0_i32_1 = arith.constant 0 : i32
    return %c0_i32, %c0_i32_0 : i32, i32
  }
  func.func @transform_3(%arg0: i32) -> (i32, i32) {
    %c0_i32 = arith.constant 0 : i32
    %c0_i32_0 = arith.constant 0 : i32
    %c0_i32_1 = arith.constant 0 : i32
    return %c0_i32, %c0_i32_0 : i32, i32
  }
  func.func @transform_4(%arg0: i32) -> (i32, i32, i32) {
    %c0_i32 = arith.constant 0 : i32
    %c0_i32_0 = arith.constant 0 : i32
    %c0_i32_1 = arith.constant 0 : i32
    return %arg0, %c0_i32, %c0_i32_0 : i32, i32, i32
  }
}

</mosaic_0001>

<bundles_post_ra>
// kernel: ncc2_loss.1
= control target key start
LH: loop header
LB: loop body
LE: loop exit
PB: predicated region body
PF: predicated region fallthrough
CT: control target
= control target key end

     0   :  { %9 = vsyncpa [#allocation3], 0  ;;  %s1305_s0 = inlined_call_operand.hbm [shape: f32[32,16], index: 0, kind: input, shape index: {}]   ;;  %s1306_s1 = inlined_call_operand.hbm [shape: f32[32,16], index: 1, kind: input, shape index: {}]   ;;  %s1307_s2 = inlined_call_operand.vmem [shape: bf16[16,16], index: 2, kind: input, shape index: {}]   ;;  %s1308_s3 = inlined_call_operand.vmem [shape: bf16[16,16], index: 3, kind: input, shape index: {}]   ;;  %s1309_s4 = inlined_call_operand.vmem [shape: f32[2,1,16], index: 4, kind: output, shape index: {}]  }
   0x1   :  { %11 = vsyncpa [#allocation3 + $0x1], 0 }
   0x2   :  { %12 = vsyncpa [#allocation5], 0 }
   0x3   :  { %14 = vsyncpa [#allocation5 + $0x1], 0  ;;  %s1076_s15 = smov 0   ;;  %s1078_s16 = smov 0  }
   0x4   :  { %s1080_s17 = smov 0   ;;  %s1082_s18 = smov 0  }
   0x5 LB: > { %s1095_s19 = sadd.s32 4294967295, %s1038_s18   ;;  %s1098_s20 = sadd.s32 1, %s1038_s18   ;;  %s1038_s18 = sphi %s1082_s18, %s1319_s18   ;;  %s1034_s17 = sphi %s1080_s17, %s1318_s17   ;;  %s1030_s16 = sphi %s1078_s16, %s1317_s16   ;;  %s1026_s15 = sphi %s1076_s15, %s1316_s15  }
   0x6   : > { %s24_s21 = ssub.s32 %s1038_s18, %s1098_s20  ;;  %s27_s22 = sadd.s32 1, %s1034_s17 }
   0x7   : > { %p25_p0 = scmp.eq.s32.totalorder %s24_s21, 0  ;;  %p34_p1 = scmp.ne.s32.totalorder %s1034_s17, %s1030_s16 }
   0x8   : > { %p35_p2 = scmp.eq.s32.totalorder %s1038_s18, 0  ;;  %p40_p3 = scmp.ne.s32.totalorder %s1030_s16, %s1026_s15 }
   0x9   : > { %s1108_s23 = scalar_select %p25_p0, %s1034_s17, %s27_s22  }
   0xa   : > { %p36_p4 = por %p35_p2, %p34_p1  ;;  %p41_p5 = scmp.eq.s32.totalorder %s1095_s19, 0 }
   0xb   : > { %p896_p6 = scmp.lt.s32.totalorder %s1038_s18, 2  ;;  %s1117_s25 = sand.u32 1, %s1034_s17  }
   0xc   : > { %p1112_p7 = por %p41_p5, %p40_p3  ;;  %s786_s26 = sshll.u32 %s1117_s25, 4 }
   0xd   : > { %s811_s27 = sshll.u32 %s1038_s18, 8  ;;  %s168_s5 = scalar_lea.vmem [#allocation2], %s786_s26 }
   0xe   : > { %s1311_s24 = scalar_select %p1112_p7, 1, 0 }
   0xf   : > { %s1126_s30 = scalar_lea.hbm %s1305_s0, %s811_s27  ;;  %s175_s6 = sshll.u32 %s168_s5, 4  ;;  %s1130_s6 = int_to_ptr.vmem [resolvable:$true] %s175_s6 }
  0x10   : > { %p1132_p8 = pnand %p896_p6, %p36_p4  ;;  %s165_s8 = scalar_lea.sflag [#allocation3], %s1117_s25 }
  0x11   : > { %s944_s9 = scalar_lea.hbm %s1126_s30, 256  ;;  %s949_s12 = scalar_lea.hbm %s1305_s0, 512 }
  0x12   : > { %p945_p10 = scmp.ne.s32.totalorder %s1126_s30, %s944_s9  ;;  %p946_p11 = pneg %p1132_p8 }
  0x13   : > { %p950_p0 = scmp.lt.s32.totalorder %s1126_s30, %s1305_s0  ;;  %p951_p1 = scmp.lt.s32.totalorder %s949_s12, %s944_s9 }
  0x14   : > { %p947_p12 = pnand %p946_p11, %p945_p10 }
  0x15   : > { %p952_p2 = por %p951_p1, %p950_p0 }
  0x16   : > { %p948_p13 = pneg %p947_p12 }
  0x18   : > { %p953_p3 = pnand %p952_p2, %p948_p13 }
  0x1a   : > { %956 = shalt.err (!%p953_p3)
}
  0x1b   : > { %s957_s15 = scalar_lea.vmem %s1130_s6, 256  ;;  %s1040_s21 = smov [#allocation2]  }
  0x1c   : > { %p958_p4 = scmp.ne.s32.totalorder %s1130_s6, %s957_s15  ;;  %s962_s22 = sshll.u32 %s1040_s21, 4  ;;  %s963_s22 = int_to_ptr.vmem [resolvable:$false] %s962_s22 }
  0x1d   : > { %s964_s28 = scalar_lea.vmem %s963_s22, 512  ;;  %p965_p10 = scmp.lt.s32.totalorder %s1130_s6, %s963_s22 }
  0x1e   : > { %p960_p5 = pnand %p958_p4, %p946_p11  ;;  %p966_p12 = scmp.lt.s32.totalorder %s964_s28, %s957_s15 }
  0x20   : > { %p961_p6 = pneg %p960_p5  ;;  %p967_p9 = por %p966_p12, %p965_p10 }
  0x22   : > { %p968_p0 = pnand %p967_p9, %p961_p6 }
  0x24   : > { %971 = shalt.err (!%p968_p0)
}
  0x25   : > { %s1041_s29 = smov 128   ;;  %s1042_s5 = smov 8  }
  0x26   : > { %892 = dma.hbm_to_vmem [thread:$0]  (!%p1132_p8), %s1126_s30, 256, %s1130_s6, %s165_s8, %s1041_s29, %s1041_s29, %s1042_s5  }
  0x27   : > { %p204_p9 = scmp.lt.s32.totalorder %s1038_s18, 3  ;;  %s1173_s11 = scalar_lea.hbm %s1306_s1, %s811_s27 }
  0x28   : > { %p1313_p13 = scmp.ge.s32.totalorder %s1038_s18, 1  ;;  %s189_s13 = scalar_lea.vmem [#allocation4], %s786_s26 }
  0x29   : > { %s196_s14 = sshll.u32 %s189_s13, 4  ;;  %s186_s30 = scalar_lea.sflag [#allocation5], %s1117_s25  ;;  %s1183_s14 = int_to_ptr.vmem [resolvable:$true] %s196_s14 }
  0x2a   : > { %p1177_p1 = pnand %p1313_p13, %p204_p9  ;;  %s972_s6 = scalar_lea.hbm %s1173_s11, 256 }
  0x2b   : > { %p973_p2 = scmp.ne.s32.totalorder %s1173_s11, %s972_s6  ;;  %s977_s8 = scalar_lea.hbm %s1306_s1, 512 }
  0x2c   : > { %p978_p5 = scmp.lt.s32.totalorder %s1173_s11, %s1306_s1  ;;  %p979_p6 = scmp.lt.s32.totalorder %s977_s8, %s972_s6 }
  0x2d   : > { %p975_p3 = pnand %p973_p2, %p946_p11 }
  0x2e   : > { %p980_p10 = por %p979_p6, %p978_p5 }
  0x2f   : > { %p976_p4 = pneg %p975_p3 }
  0x31   : > { %p981_p12 = pnand %p980_p10, %p976_p4 }
  0x33   : > { %984 = shalt.err (!%p981_p12)
}
  0x34   : > { %s985_s25 = scalar_lea.vmem %s1183_s14, 256  ;;  %s1043_s26 = smov [#allocation4]  }
  0x35   : > { %p986_p0 = scmp.ne.s32.totalorder %s1183_s14, %s985_s25  ;;  %s990_s22 = sshll.u32 %s1043_s26, 4  ;;  %s991_s22 = int_to_ptr.vmem [resolvable:$false] %s990_s22 }
  0x36   : > { %s992_s28 = scalar_lea.vmem %s991_s22, 512  ;;  %p993_p2 = scmp.lt.s32.totalorder %s1183_s14, %s991_s22 }
  0x37   : > { %p988_p9 = pnand %p986_p0, %p946_p11  ;;  %p994_p3 = scmp.lt.s32.totalorder %s992_s28, %s985_s25 }
  0x39   : > { %p989_p13 = pneg %p988_p9  ;;  %p995_p7 = por %p994_p3, %p993_p2 }
  0x3b   : > { %p996_p5 = pnand %p995_p7, %p989_p13 }
  0x3d   : > { %999 = shalt.err (!%p996_p5)
}
  0x3e   : > { %895 = dma.hbm_to_vmem [thread:$0]  (!%p1132_p8), %s1173_s11, 256, %s1183_s14, %s186_s30, %s1041_s29, %s1041_s29, %s1042_s5  }
  0x3f   : > { %208 = sbr.rel (%p1177_p1) target bundleno = 1140 (0x474), region = 36  ;;  %s210_s9 = sand.u32 (!%p1177_p1), 1, %s1030_s16  }
  0x40   : > { %s793_s10 = sshll.u32 (!%p1177_p1), %s210_s9, 4  ;;  %s211_s13 = scalar_lea.sflag (!%p1177_p1), [#allocation3], %s210_s9 }
  0x41   : > { %s214_s6 = scalar_lea.vmem (!%p1177_p1), [#allocation2], %s793_s10  ;;  %p1315_p11 = scmp.ne.s32.totalorder (!%p1177_p1), %s1311_s24, 0 }
  0x44   : > { %1017 = dma.done.wait (%p1315_p11), %s211_s13, 256  }
  0x45   : > { %1019 = vsyncadd (%p1315_p11), %s211_s13, 4294967040  ;;  %s220_s7 = scalar_lea.sflag [#allocation5], %s210_s9  ;;  %s223_s18 = scalar_lea.vmem [#allocation4], %s793_s10 }
  0x46   : > { %1021 = dma.done.wait (%p1315_p11), %s220_s7, 256  }
  0x47   : > { %1023 = vsyncadd (%p1315_p11), %s220_s7, 4294967040  ;;  %v1044_v0 = vmov 0.0   ;;  %vm1045_vm0 = vmmov 0   ;;  %v938_v1 = vld [vmem:[%s1308_s3] sm:$0xff]   ;;  %v258_v3 = vld [vmem:[%s214_s6 + $0x8] sm:$0xff]  ;;  %vm307_vm1 = vcmask 130048  }
  0x48   : > { %851 = vmatprep.subr.bf16.mxu1 %v1044_v0  ;;  %829 = vmatprep.subr.bf16.mxu0 %v1044_v0  ;;  %v257_v2 = vld [vmem:[%s214_s6] sm:$0xff]  ;;  %v260_v6 = vld [vmem:[%s223_s18 + $0x8] sm:$0xff]  ;;  %v266_v11 = vmul.f32 %v258_v3, %v258_v3  ;;  %s1046_s24 = smov 16   ;;  %s1047_s11 = smov 32   ;;  %vm518_vm2 = vcmask 261120   ;;  %vm521_vm3 = vcmask 392192  }
  0x49   : > { %853 = vmatprep.mubr.msk.bf16.mxu1 %vm1045_vm0, %v1044_v0  ;;  %831 = vmatprep.mubr.msk.bf16.mxu0 %vm1045_vm0, %v1044_v0  ;;  %v259_v4 = vld [vmem:[%s223_s18] sm:$0xff]  ;;  %v271_v5 = vpack.c.bf16 %v258_v3, %v257_v2  ;;  %v265_v10 = vmul.f32 %v257_v2, %v257_v2  ;;  %v268_v24 = vmul.f32 %v260_v6, %v260_v6  ;;  %s1048_s12 = smov 48   ;;  %s1049_s14 = smov 64   ;;  %vm524_vm4 = vcmask 523264  }
  0x4a   : > { %852 = vmatpush3.bf16.msra.mxu1 %v938_v1  ;;  %830 = vmatpush3.bf16.msra.mxu0 %v938_v1  ;;  %v272_v7 = vpack.c.bf16 %v260_v6, %v259_v4  ;;  %v267_v20 = vmul.f32 %v259_v4, %v259_v4  ;;  %v269_v28 = vmul.f32 %v259_v4, %v257_v2  ;;  %s1050_s8 = smov 112   ;;  %vm685_vm5 = vcmask 654848   ;;  %p253_p7 = scmp.lt.s32.totalorder %s1095_s19, 1 }
  0x4b   : > { %879 = vmatprep.subr.bf16.mxu1 %v1044_v0  ;;  %v276_v8 = vunpack.c.l.bf16 %v271_v5  ;;  %v277_v9 = vunpack.c.h.bf16 %v271_v5  ;;  %873 = vmatprep.subr.bf16.mxu0 %v1044_v0  ;;  %v273_v19 = vpack.c.bf16 %v266_v11, %v265_v10  ;;  %v270_v32 = vmul.f32 %v260_v6, %v258_v3 }
  0x4c   : > { %v278_v14 = vunpack.c.l.bf16 %v272_v7  ;;  %v279_v15 = vunpack.c.h.bf16 %v272_v7  ;;  %v274_v27 = vpack.c.bf16 %v268_v24, %v267_v20  ;;  %s1321_s19 = smov (!%p253_p7, %s1095_s19), 1  ;;  %vm699_vm6 = vcmask 122880  }
  0x4d   : > { %854 = vmatmul.mubr.msk.bf16.vlgmr.msra.gmra.mxu1 %vm307_vm1, %v271_v5  ;;  %v286_v12 = vsub.f32 %v257_v2, %v276_v8  ;;  %v287_v13 = vsub.f32 %v258_v3, %v277_v9  ;;  %v280_v22 = vunpack.c.l.bf16 %v273_v19  ;;  %v281_v23 = vunpack.c.h.bf16 %v273_v19  ;;  %s255_s25 = scalar_lea.vmem %s1309_s4, %s1321_s19 }
  0x4e   : > { %857 = vmatprep.mubr.msk.bf16.mxu1 %vm1045_vm0, %v1044_v0  ;;  %v288_v17 = vsub.f32 %v259_v4, %v278_v14  ;;  %v289_v18 = vsub.f32 %v260_v6, %v279_v15  ;;  %v282_v30 = vunpack.c.l.bf16 %v274_v27  ;;  %v283_v31 = vunpack.c.h.bf16 %v274_v27 }
  0x4f   : > { %v296_v16 = vpack.c.bf16 %v287_v13, %v286_v12  ;;  %v290_v25 = vsub.f32 %v265_v10, %v280_v22  ;;  %v291_v26 = vsub.f32 %v266_v11, %v281_v23  ;;  %v275_v35 = vpack.c.bf16 %v270_v32, %v269_v28 }
  0x50   : > { %v297_v21 = vpack.c.bf16 %v289_v18, %v288_v17  ;;  %v292_v33 = vsub.f32 %v267_v20, %v282_v30  ;;  %v293_v34 = vsub.f32 %v268_v24, %v283_v31 }
  0x51   : > { %832 = vmatmul.mubr.msk.bf16.vlgmr.msra.gmra.mxu0 %vm307_vm1, %v296_v16  ;;  %v298_v29 = vpack.c.bf16 %v291_v26, %v290_v25  ;;  %v284_v37 = vunpack.c.l.bf16 %v275_v35  ;;  %v285_v38 = vunpack.c.h.bf16 %v275_v35 }
  0x52   : > { %835 = vmatprep.mubr.msk.bf16.mxu0 %vm1045_vm0, %v1044_v0  ;;  %v299_v36 = vpack.c.bf16 %v293_v34, %v292_v33 }
  0x53   : > { %v294_v39 = vsub.f32 %v269_v28, %v284_v37  ;;  %v295_v40 = vsub.f32 %v270_v32, %v285_v38 }
  0x55   : > { %858 = vmatmul.mubr.msk.bf16.gmra.mxu1 %vm307_vm1, %v272_v7  ;;  %v300_v41 = vpack.c.bf16 %v295_v40, %v294_v39 }
  0x56   : > { %861 = vmatprep.mubr.msk.bf16.mxu1 %vm1045_vm0, %v1044_v0 }
  0x59   : > { %836 = vmatmul.mubr.msk.bf16.gmra.mxu0 %vm307_vm1, %v297_v21 }
  0x5a   : > { %839 = vmatprep.mubr.msk.bf16.mxu0 %vm1045_vm0, %v1044_v0 }
  0x5d   : > { %862 = vmatmul.mubr.msk.bf16.gmra.mxu1 %vm307_vm1, %v273_v19 }
  0x5e   : > { %865 = vmatprep.mubr.msk.bf16.mxu1 %vm1045_vm0, %v1044_v0 }
  0x61   : > { %840 = vmatmul.mubr.msk.bf16.gmra.mxu0 %vm307_vm1, %v298_v29 }
  0x62   : > { %843 = vmatprep.mubr.msk.bf16.mxu0 %vm1045_vm0, %v1044_v0 }
  0x65   : > { %866 = vmatmul.mubr.msk.bf16.gmra.mxu1 %vm307_vm1, %v274_v27 }
  0x66   : > { %869 = vmatprep.mubr.msk.bf16.mxu1 %vm1045_vm0, %v1044_v0 }
  0x69   : > { %844 = vmatmul.mubr.msk.bf16.gmra.mxu0 %vm307_vm1, %v299_v36 }
  0x6a   : > { %847 = vmatprep.mubr.msk.bf16.mxu0 %vm1045_vm0, %v1044_v0 }
  0x6d   : > { %870 = vmatmul.mubr.msk.bf16.gmra.mxu1 %vm307_vm1, %v275_v35 }
  0x6e   : > { %881 = vmatprep.mubr.msk.bf16.mxu1 %vm1045_vm0, %v1044_v0 }
  0x71   : > { %848 = vmatmul.mubr.msk.bf16.gmra.mxu0 %vm307_vm1, %v300_v41 }
  0x72   : > { %875 = vmatprep.mubr.msk.bf16.mxu0 %vm1045_vm0, %v1044_v0 }
 0x10d   : > { %v445_v42 = vpop.f32.mrf.mxu1 }
 0x10f   : > { %v855_v43 = vpop.f32.mrf.mxu1 }
 0x111   : > { %v448_v44 = vpop.f32.mrf.mxu1  ;;  %v357_v45 = vpop.f32.mrf.mxu0 }
 0x112   : > { %v1263_v46 = vadd.f32 %v445_v42, %v357_v45  ;;  %v939_v45 = vld [vmem:[%s1307_s2] sm:$0xff]  }
 0x113   : > { %v856_v47 = vpop.f32.mrf.mxu1  ;;  %v833_v48 = vpop.f32.mrf.mxu0 }
 0x115   : > { %v453_v49 = vpop.f32.mrf.mxu1  ;;  %v360_v50 = vpop.f32.mrf.mxu0 }
 0x116   : > { %v1265_v51 = vadd.f32 %v448_v44, %v360_v50 }
 0x117   : > { %v859_v52 = vpop.f32.mrf.mxu1  ;;  %v834_v53 = vpop.f32.mrf.mxu0 }
 0x119   : > { %v456_v54 = vpop.f32.mrf.mxu1  ;;  %v365_v55 = vpop.f32.mrf.mxu0 }
 0x11a   : > { %v454_v56 = vadd.f32 %v453_v49, %v365_v55 }
 0x11b   : > { %v860_v57 = vpop.f32.mrf.mxu1  ;;  %v837_v58 = vpop.f32.mrf.mxu0 }
 0x11c   : > { %486 = vrot.lane.b32.xlu0 %v454_v56, %s1046_s24 }
 0x11d   : > { %v461_v59 = vpop.f32.mrf.mxu1  ;;  %v368_v60 = vpop.f32.mrf.mxu0 }
 0x11e   : > { %v457_v61 = vadd.f32 %v456_v54, %v368_v60 }
 0x11f   : > { %v863_v62 = vpop.f32.mrf.mxu1  ;;  %v838_v63 = vpop.f32.mrf.mxu0 }
 0x120   : > { %488 = vrot.lane.b32.xlu0 %v457_v61, %s1046_s24 }
 0x121   : > { %v464_v0 = vpop.f32.mrf.mxu1  ;;  %v373_v1 = vpop.f32.mrf.mxu0 }
 0x122   : > { %v462_v2 = vadd.f32 %v461_v59, %v373_v1 }
 0x123   : > { %v864_v3 = vpop.f32.mrf.mxu1  ;;  %v841_v4 = vpop.f32.mrf.mxu0 }
 0x124   : > { %494 = vrot.lane.b32.xlu1 %v462_v2, %s1047_s11 }
 0x125   : > { %v469_v5 = vpop.f32.mrf.mxu1  ;;  %v376_v6 = vpop.f32.mrf.mxu0 }
 0x126   : > { %v465_v7 = vadd.f32 %v464_v0, %v376_v6 }
 0x127   : > { %v867_v8 = vpop.f32.mrf.mxu1  ;;  %v842_v9 = vpop.f32.mrf.mxu0 }
 0x128   : > { %496 = vrot.lane.b32.xlu1 %v465_v7, %s1047_s11 }
 0x129   : > { %v472_v10 = vpop.f32.mrf.mxu1  ;;  %v381_v11 = vpop.f32.mrf.mxu0 }
 0x12a   : > { %v470_v12 = vadd.f32 %v469_v5, %v381_v11 }
 0x12b   : > { %v868_v13 = vpop.f32.mrf.mxu1  ;;  %v845_v14 = vpop.f32.mrf.mxu0 }
 0x12c   : > { %502 = vrot.lane.b32.xlu0 %v470_v12, %s1048_s12 }
 0x12d   : > { %v477_v15 = vpop.f32.mrf.mxu1  ;;  %v384_v16 = vpop.f32.mrf.mxu0 }
 0x12e   : > { %v473_v17 = vadd.f32 %v472_v10, %v384_v16 }
 0x12f   : > { %v871_v18 = vpop.f32.mrf.mxu1  ;;  %v846_v19 = vpop.f32.mrf.mxu0 }
 0x130   : > { %504 = vrot.lane.b32.xlu1 %v473_v17, %s1048_s12 }
 0x131   : > { %v480_v20 = vpop.f32.mrf.mxu1  ;;  %v389_v21 = vpop.f32.mrf.mxu0 }
 0x132   : > { %v478_v22 = vadd.f32 %v477_v15, %v389_v21 }
 0x133   : > { %v872_v23 = vpop.f32.mrf.mxu1  ;;  %v849_v24 = vpop.f32.mrf.mxu0 }
 0x134   : > { %510 = vrot.lane.b32.xlu0 %v478_v22, %s1049_s14 }
 0x135   : > { %v392_v25 = vpop.f32.mrf.mxu0 }
 0x136   : > { %v481_v26 = vadd.f32 %v480_v20, %v392_v25 }
 0x137   : > { %v850_v27 = vpop.f32.mrf.mxu0 }
 0x138   : > { %512 = vrot.lane.b32.xlu1 %v481_v26, %s1049_s14 }
 0x18e   : > { %v487_v28 = vpop.permute.xlu0 %486 }
 0x18f   : > { %v516_v34 = vsel %vm307_vm1, %v1263_v46, %v487_v28 }
 0x192   : > { %v489_v30 = vpop.permute.xlu0 %488 }
 0x193   : > { %v517_v35 = vsel %vm307_vm1, %v1265_v51, %v489_v30 }
 0x196   : > { %v495_v29 = vpop.permute.xlu1 %494 }
 0x197   : > { %v519_v37 = vsel %vm518_vm2, %v516_v34, %v495_v29 }
 0x19a   : > { %v497_v31 = vpop.permute.xlu1 %496 }
 0x19b   : > { %v520_v38 = vsel %vm518_vm2, %v517_v35, %v497_v31 }
 0x19e   : > { %v503_v32 = vpop.permute.xlu0 %502 }
 0x19f   : > { %v522_v39 = vsel %vm521_vm3, %v519_v37, %v503_v32 }
 0x1a2   : > { %v505_v33 = vpop.permute.xlu1 %504 }
 0x1a3   : > { %v523_v40 = vsel %vm521_vm3, %v520_v38, %v505_v33 }
 0x1a6   : > { %v511_v36 = vpop.permute.xlu0 %510 }
 0x1a7   : > { %v525_v42 = vsel %vm524_vm4, %v522_v39, %v511_v36 }
 0x1aa   : > { %v513_v41 = vpop.permute.xlu1 %512 }
 0x1ab   : > { %v526_v43 = vsel %vm524_vm4, %v523_v40, %v513_v41 }
 0x1ac   : > { %v527_v44 = vpack.c.bf16 %v526_v43, %v525_v42 }
 0x1ae   : > { %v528_v47 = vunpack.c.l.bf16 %v527_v44  ;;  %v529_v48 = vunpack.c.h.bf16 %v527_v44  ;;  %880 = vmatpush3.bf16.msra.mxu1 %v527_v44 }
 0x1b0   : > { %v530_v46 = vsub.f32 %v525_v42, %v528_v47  ;;  %v531_v49 = vsub.f32 %v526_v43, %v529_v48 }
 0x1b1   : > { %882 = vmatmul.mubr.msk.bf16.vlgmr.msra.gmra.mxu1 %vm307_vm1, %v939_v45 }
 0x1b2   : > { %v532_v50 = vpack.c.bf16 %v531_v49, %v530_v46 }
 0x1b4   : > { %874 = vmatpush3.bf16.msra.mxu0 %v532_v50 }
 0x1b7   : > { %876 = vmatmul.mubr.msk.bf16.vlgmr.msra.gmra.mxu0 %vm307_vm1, %v939_v45 }
 0x271   : > { %v616_v51 = vpop.f32.mrf.mxu1 }
 0x273   : > { %v883_v52 = vpop.f32.mrf.mxu1 }
 0x275   : > { %v619_v53 = vpop.f32.mrf.mxu1 }
 0x277   : > { %v575_v54 = vpop.f32.mrf.mxu0  ;;  %v884_v55 = vpop.f32.mrf.mxu1 }
 0x278   : > { %v617_v56 = vadd.f32 %v616_v51, %v575_v54 }
 0x279   : > { %v877_v57 = vpop.f32.mrf.mxu0 }
 0x27a   : > { %v645_v58 = vmul.f32 %v617_v56, %v617_v56 }
 0x27b   : > { %v578_v59 = vpop.f32.mrf.mxu0 }
 0x27c   : > { %v620_v60 = vadd.f32 %v619_v53, %v578_v59  ;;  %v647_v61 = vmul.f32 0.012345679, %v645_v58 }
 0x27d   : > { %v878_v62 = vpop.f32.mrf.mxu0 }
 0x27e   : > { %651 = vrot.lane.b32.xlu0 %v647_v61, %s1047_s11  ;;  %v646_v63 = vmul.f32 %v620_v60, %v620_v60 }
 0x280   : > { %v648_v0 = vmul.f32 0.012345679, %v646_v63 }
 0x282   : > { %653 = vrot.lane.b32.xlu1 %v648_v0, %s1047_s11 }
 0x2f0   : > { %v652_v1 = vpop.permute.xlu0 %651 }
 0x2f1   : > { %v657_v2 = vsub.f32 %v617_v56, %v652_v1 }
 0x2f3   : > { %663 = vrot.lane.b32.xlu0 %v657_v2, %s1050_s8 }
 0x2f4   : > { %v654_v3 = vpop.permute.xlu1 %653 }
 0x2f5   : > { %v658_v4 = vsub.f32 %v620_v60, %v654_v3 }
 0x2f7   : > { %625 = vrot.lane.b32.xlu0 %v617_v56, %s1050_s8  ;;  %665 = vrot.lane.b32.xlu1 %v658_v4, %s1050_s8 }
 0x2fb   : > { %627 = vrot.lane.b32.xlu1 %v620_v60, %s1050_s8 }
 0x365   : > { %v664_v5 = vpop.permute.xlu0 %663 }
 0x366   : > { %v669_v6 = vmul.f32 %v664_v5, %v657_v2 }
 0x368   : > { %v671_v7 = vadd.f32 1e-05, %v669_v6 }
 0x369   : > { %v626_v8 = vpop.permute.xlu0 %625  ;;  %v666_v9 = vpop.permute.xlu1 %665 }
 0x36a   : > { %940 = vrcp.f32 %v671_v7  ;;  %v631_v10 = vmul.f32 %v626_v8, %v617_v56  ;;  %v670_v11 = vmul.f32 %v666_v9, %v658_v4 }
 0x36c   : > { %v633_v12 = vmul.f32 0.012345679, %v631_v10  ;;  %v672_v13 = vadd.f32 1e-05, %v670_v11 }
 0x36d   : > { %v628_v14 = vpop.permute.xlu1 %627 }
 0x36e   : > { %942 = vrcp.f32 %v672_v13  ;;  %v632_v15 = vmul.f32 %v628_v14, %v620_v60  ;;  %637 = vrot.lane.b32.xlu0 %v633_v12, %s1049_s14 }
 0x370   : > { %v634_v16 = vmul.f32 0.012345679, %v632_v15 }
 0x372   : > { %639 = vrot.lane.b32.xlu1 %v634_v16, %s1049_s14 }
 0x377   : > { %v941_v17 = vpop.eup %940 }
 0x378   : > { %677 = vrot.lane.b32.xlu0 %v941_v17, %s1047_s11 }
 0x37b   : > { %v943_v18 = vpop.eup %942 }
 0x37c   : > { %679 = vrot.lane.b32.xlu1 %v943_v18, %s1047_s11 }
 0x3e0   : > { %v638_v19 = vpop.permute.xlu0 %637 }
 0x3e1   : > { %v643_v21 = vsub.f32 %v617_v56, %v638_v19 }
 0x3e3   : > { %v659_v24 = vmul.f32 %v643_v21, %v643_v21 }
 0x3e4   : > { %v640_v20 = vpop.permute.xlu1 %639 }
 0x3e5   : > { %v644_v22 = vsub.f32 %v620_v60, %v640_v20 }
 0x3e7   : > { %v660_v25 = vmul.f32 %v644_v22, %v644_v22 }
 0x3ea   : > { %v678_v23 = vpop.permute.xlu0 %677 }
 0x3eb   : > { %v683_v26 = vmul.f32 %v678_v23, %v659_v24 }
 0x3ed   : > { %v686_v29 = vsel %vm685_vm5, %v683_v26, 0.0 }
 0x3ee   : > { %v680_v27 = vpop.permute.xlu1 %679 }
 0x3ef   : > { %v684_v28 = vmul.f32 %v680_v27, %v660_v25 }
 0x3f1   : > { %v687_v30 = vsel %vm685_vm5, %v684_v28, 0.0 }
 0x3f2   : > { %v688_v31 = vadd.f32 %v687_v30, %v686_v29 }
 0x3f4   : > { %v689_v32 = vrot.slane %v688_v31, 4 }
 0x3f6   : > { %v690_v33 = vadd.f32 %v689_v32, %v688_v31 }
 0x3f8   : > { %v691_v34 = vrot.slane %v690_v33, 2 }
 0x3fa   : > { %v692_v35 = vadd.f32 %v691_v34, %v690_v33 }
 0x3fc   : > { %v693_v36 = vrot.slane %v692_v35, 1 }
 0x3fe   : > { %v694_v37 = vadd.f32 %v693_v36, %v692_v35 }
 0x400   : > { %696 = vrot.lane.b32.xlu0 %v694_v37, %s1049_s14 }
 0x472   : > { %v697_v38 = vpop.permute.xlu0 %696 }
 0x473   : > { %700 = vst.msk [vmem:[%s255_s25] sm:$0x1] %vm699_vm6, %v697_v38 }
 0x474 PF: > { %p17_p8 = scmp.ge.s32.totalorder %s1098_s20, 4   ;;  %s1316_s15 = smov %s1030_s16 }
 0x475   : > { %s1317_s16 = smov %s1034_s17  ;;  %s1318_s17 = smov %s1108_s23 }
 0x476   : > { %s1319_s18 = smov %s1098_s20  ;;  %19 = sbr.rel (!%p17_p8) target bundleno = 5 (0x5), region = 89 }
 0x47b   :  { %718 = vsyncpa [#allocation3], 1 }
 0x47c   :  { %720 = vsyncpa [#allocation3 + $0x1], 1 }
 0x47d   :  { %721 = vsyncpa [#allocation5], 1 }
 0x47e   :  { %723 = vsyncpa [#allocation5 + $0x1], 1 }

</bundles_post_ra>
